<compile_context>
chip_gen: v7x
topology: tpu7x:2x2x1
jax: 0.10.0
libtpu: 0.0.40
codegen_flags: <defaults>
</compile_context>

<pallas_src>
import functools

import jax
import jax.numpy as jnp
from jax.experimental import pallas as pl
from jax.experimental.pallas import tpu as pltpu


# --------------------------------------------------------------------------
# Kernel
# --------------------------------------------------------------------------
def _valuenet_kernel(x_ref, w1_ref, b1_ref, w2_ref, b2_ref, out_ref, *, chunk_b):
    """fc2(relu(fc1(x))) for one (bb, n_states) batch tile.

    The tile is processed in static row sub-chunks so the (rows, n_hiddens)
    hidden intermediate (lane-padded to 128) stays small even when the DMA
    tile is tens of MB.
    """
    bb = x_ref.shape[0]
    w1 = w1_ref[...]
    b1 = b1_ref[...]
    w2 = w2_ref[...]
    b2 = b2_ref[...]
    hi = jax.lax.Precision.HIGHEST

    def do_chunk(r0, rows):
        # Static slice offsets/sizes (Python ints) -> plain vector loads/stores.
        xc = x_ref[pl.ds(r0, rows), :]                                  # (rows, S)
        h = jnp.dot(xc, w1, preferred_element_type=jnp.float32,
                    precision=hi)                                        # (rows, H)
        h = jnp.maximum(h + b1, 0.0)
        # fc2 (out_features == 1): contract hidden axis of h against the
        # [1, n_hiddens] w2 row -> (1, rows), already lane-dense.
        v = jax.lax.dot_general(
            w2, h,
            dimension_numbers=(((1,), (1,)), ((), ())),
            preferred_element_type=jnp.float32,
            precision=hi)                                                # (1, rows)
        out_ref[:, pl.ds(r0, rows)] = (v + b2).astype(out_ref.dtype)

    step = min(chunk_b, bb)
    n_full, rem = bb // step, bb % step
    for c in range(n_full):          # static unroll (<= 32 chunks)
        do_chunk(c * step, step)
    if rem:
        do_chunk(n_full * step, rem)


# --------------------------------------------------------------------------
# Tiling / generation helpers
# --------------------------------------------------------------------------
def _cdiv(a, b):
    return (a + b - 1) // b


def _round_up(a, m):
    return _cdiv(a, m) * m


def _tpu_generation():
    try:
        kind = jax.devices()[0].device_kind.lower()
    except Exception:
        return "unknown"
    if "v7" in kind:
        return "v7x"
    if "v6" in kind:
        return "v6e"
    if "v5" in kind and ("lite" in kind or "v5e" in kind):
        return "v5e"
    if "v5" in kind:
        return "v5p"
    return "unknown"


def _vmem_limit_bytes(gen):
    if gen == "v7x":
        return 48 << 20          # physical 64 MiB/TC -> leave headroom
    if gen in ("v5e", "v6e", "v5p"):
        return 64 << 20          # physical 128 MiB; scoped default 16/32 MiB
    return 32 << 20              # conservative for unknown chips


def _pick_block(B, n_states, gen, vmem_limit, block_b):
    """Batch-tile size: multiple of 128, sized against the VMEM budget
    (8x lane padding of x counted); v7x keeps an even >= 2 grid-step count."""
    if block_b is not None:                      # explicit override (testing)
        if B <= 128:
            return B, 1
        bb = max(128, (min(block_b, B) // 128) * 128)
        return bb, _cdiv(B, bb)

    if B <= 128:
        return B, 1                              # single block == full array dims

    # Per-batch-row VMEM cost of the pipelined buffers:
    #   x  : 2 buffers * 4 B * lane-padded n_states (-> 128)
    #   out: 2 buffers * 4 B * 8 sublanes (per lane-dense column)
    per_row = 2 * 4 * _round_up(n_states, 128) + 2 * 4 * 8
    fixed = 6 << 20                              # weights, h temps, compiler slack
    cap = max(128, ((vmem_limit - fixed) // per_row) // 128 * 128)
    cap = min(cap, 32768)

    bb = max(128, (min(cap, B) // 128) * 128)
    nblocks = _cdiv(B, bb)

    # v7x has 2 TensorCores: keep the parallel grid axis even (>= 2 steps).
    if gen == "v7x" and B >= 256 and nblocks % 2 == 1:
        target = nblocks + 1
        bb2 = min(cap, max(128, _round_up(_cdiv(B, target), 128)))
        if _cdiv(B, bb2) % 2 == 0:
            bb, nblocks = bb2, _cdiv(B, bb2)
    return bb, nblocks


# --------------------------------------------------------------------------
# Wrapper
# --------------------------------------------------------------------------
def _xla_forward(x, w1, b1, w2, b2):
    hi = jax.lax.Precision.HIGHEST
    h = jnp.maximum(jnp.dot(x, w1, precision=hi) + b1, 0.0)
    return jnp.dot(h, w2.T, precision=hi) + b2


@functools.partial(jax.jit,
                   static_argnames=("block_b", "chunk_b", "min_pallas_batch"))
def valuenet_forward(x, w1, b1, w2, b2, *, block_b=None, chunk_b=1024,
                     min_pallas_batch=1024):
    """x: [B, n_states] f32; w1: [n_states, n_hiddens]; b1: [1, n_hiddens];
    w2: [1, n_hiddens] (row layout); b2: [1, 1]  ->  value: [B, 1] f32."""
    B, n_states = x.shape
    n_hiddens = w1.shape[1]

    # Small batches: launch + fixed per-step cost dominate -> let XLA fuse it.
    if B < min_pallas_batch:
        return _xla_forward(x, w1, b1, w2, b2)

    gen = _tpu_generation()
    vmem_limit = _vmem_limit_bytes(gen)
    bb, nblocks = _pick_block(B, n_states, gen, vmem_limit, block_b)
    B_pad = nblocks * bb

    flops = 2 * B * n_states * n_hiddens + 2 * B * n_hiddens
    bytes_accessed = 4 * (B * n_states + B
                          + n_states * n_hiddens + 2 * n_hiddens + 1)

    out = pl.pallas_call(
        functools.partial(_valuenet_kernel, chunk_b=chunk_b),
        out_shape=jax.ShapeDtypeStruct((1, B_pad), jnp.float32),
        grid=(nblocks,),
        in_specs=[
            pl.BlockSpec((bb, n_states), lambda i: (i, 0)),          # x tile
            pl.BlockSpec((n_states, n_hiddens), lambda i: (0, 0)),   # W1 (full)
            pl.BlockSpec((1, n_hiddens), lambda i: (0, 0)),          # b1
            pl.BlockSpec((1, n_hiddens), lambda i: (0, 0)),          # w2 row
            pl.BlockSpec((1, 1), lambda i: (0, 0)),                  # b2
        ],
        out_specs=pl.BlockSpec((1, bb), lambda i: (0, i)),           # lane-dense
        compiler_params=pltpu.CompilerParams(
            dimension_semantics=("parallel",),
            vmem_limit_bytes=vmem_limit),
        cost_estimate=pl.CostEstimate(
            flops=flops, transcendentals=0, bytes_accessed=bytes_accessed),
    )(x, w1, b1, w2, b2)

    # (1, B_pad) lane-dense -> (B, 1); ragged-tail columns >= B are dropped.
    return out[0, :B].reshape(B, 1)


def init_valuenet_params(key, n_states, n_hiddens):
    """Deterministic init mimicking nn.Linear default (uniform +-1/sqrt(fan_in))."""
    k1, k2, k3, k4 = jax.random.split(key, 4)
    lim1 = 1.0 / jnp.sqrt(jnp.float32(n_states))
    lim2 = 1.0 / jnp.sqrt(jnp.float32(n_hiddens))
    w1 = jax.random.uniform(k1, (n_states, n_hiddens), jnp.float32, -lim1, lim1)
    b1 = jax.random.uniform(k2, (1, n_hiddens), jnp.float32, -lim1, lim1)
    w2 = jax.random.uniform(k3, (1, n_hiddens), jnp.float32, -lim2, lim2)  # row layout
    b2 = jax.random.uniform(k4, (1, 1), jnp.float32, -lim2, lim2)
    return w1, b1, w2, b2


if __name__ == "__main__":
    n_states = 16   # "n_stats" in the PyTorch module
    n_hiddens = 32

    key = jax.random.PRNGKey(0)
    kx1, kx2, kx3, kp = jax.random.split(key, 4)
    w1, b1, w2, b2 = init_valuenet_params(kp, n_states, n_hiddens)

    def ref_fn(xv):
        hi = jax.lax.Precision.HIGHEST
        h = jnp.maximum(jnp.dot(xv, w1, precision=hi) + b1, 0.0)
        return jnp.dot(h, w2.T, precision=hi) + b2

    # 1) Tiny batch forced through the Pallas path (single full-array block).
    x1 = jax.random.normal(kx1, (8, n_states), jnp.float32)
    o1 = jax.block_until_ready(
        valuenet_forward(x1, w1, b1, w2, b2, min_pallas_batch=0))
    assert o1.shape == (8, 1)
    assert jnp.allclose(o1, ref_fn(x1), atol=1e-4, rtol=1e-4)

    # 2) Multi-block + ragged tail (forced 128-row tiles to exercise the grid).
    x2 = jax.random.normal(kx2, (300, n_states), jnp.float32)
    o2 = jax.block_until_ready(
        valuenet_forward(x2, w1, b1, w2, b2, block_b=128, min_pallas_batch=0))
    assert o2.shape == (300, 1)
    assert jnp.allclose(o2, ref_fn(x2), atol=1e-4, rtol=1e-4)

    # 3) Default auto-tiled path: exercises the in-kernel row-chunk loop and,
    #    on v7x, the even 2-TensorCore grid split.
    x3 = jax.random.normal(kx3, (4096, n_states), jnp.float32)
    o3 = jax.block_until_ready(valuenet_forward(x3, w1, b1, w2, b2))
    assert o3.shape == (4096, 1)
    assert jnp.allclose(o3, ref_fn(x3), atol=1e-4, rtol=1e-4)

    # 4) Small-batch XLA dispatch (default threshold) agrees with the reference.
    o1_xla = jax.block_until_ready(valuenet_forward(x1, w1, b1, w2, b2))
    assert jnp.allclose(o1_xla, ref_fn(x1), atol=1e-4, rtol=1e-4)

    print("KERNEL_OK")
</pallas_src>

<mosaic_0001>
module attributes {stable_mosaic.version = 11 : i64} {
  func.func @_valuenet_kernel(%arg0: i32, %arg1: memref<8x16xf32, #tpu.memory_space<vmem>>, %arg2: memref<16x32xf32, #tpu.memory_space<vmem>>, %arg3: memref<1x32xf32, #tpu.memory_space<vmem>>, %arg4: memref<1x32xf32, #tpu.memory_space<vmem>>, %arg5: memref<1x1xf32, #tpu.memory_space<vmem>>, %arg6: memref<1x8xf32, #tpu.memory_space<vmem>>) attributes {dimension_semantics = [#tpu.dimension_semantics<parallel>], iteration_bounds = array<i64: 1>, scalar_prefetch = 0 : i64, scratch_operands = 0 : i64, tpu.core_type = #tpu.core_type<tc>, window_params = [{transform_indices = @transform_0, window_bounds = array<i64: 8, 16>}, {pipeline_mode = #tpu.pipeline_mode<synchronous>, transform_indices = @transform_1, window_bounds = array<i64: 16, 32>}, {pipeline_mode = #tpu.pipeline_mode<synchronous>, transform_indices = @transform_2, window_bounds = array<i64: 1, 32>}, {pipeline_mode = #tpu.pipeline_mode<synchronous>, transform_indices = @transform_3, window_bounds = array<i64: 1, 32>}, {pipeline_mode = #tpu.pipeline_mode<synchronous>, transform_indices = @transform_4, window_bounds = array<i64: 1, 1>}, {transform_indices = @transform_5, window_bounds = array<i64: 1, 8>}]} {
    %c0 = arith.constant 0 : index
    %c0_0 = arith.constant 0 : index
    %0 = vector.load %arg2[%c0, %c0_0] : memref<16x32xf32, #tpu.memory_space<vmem>>, vector<16x32xf32>
    %c0_1 = arith.constant 0 : index
    %c0_2 = arith.constant 0 : index
    %1 = vector.load %arg3[%c0_1, %c0_2] : memref<1x32xf32, #tpu.memory_space<vmem>>, vector<1x32xf32>
    %c0_3 = arith.constant 0 : index
    %c0_4 = arith.constant 0 : index
    %2 = vector.load %arg4[%c0_3, %c0_4] : memref<1x32xf32, #tpu.memory_space<vmem>>, vector<1x32xf32>
    %c0_5 = arith.constant 0 : index
    %c0_6 = arith.constant 0 : index
    %3 = vector.load %arg5[%c0_5, %c0_6] : memref<1x1xf32, #tpu.memory_space<vmem>>, vector<1x1xf32>
    %c0_7 = arith.constant 0 : index
    %c0_8 = arith.constant 0 : index
    %4 = vector.load %arg1[%c0_7, %c0_8] : memref<8x16xf32, #tpu.memory_space<vmem>>, vector<8x16xf32>
    %cst = arith.constant dense<0.000000e+00> : vector<8x32xf32>
    %5 = tpu.matmul %4, %0, %cst {dimension_numbers = #tpu.dot_dimension_numbers<[1], [0], [0], [1], [0, 0, 1, 1], [], []>, precision = #tpu.contract_precision<fp32>} : vector<8x16xf32>, vector<16x32xf32>, vector<8x32xf32> -> vector<8x32xf32>
    %6 = vector.broadcast %1 : vector<1x32xf32> to vector<8x32xf32>
    %7 = arith.addf %5, %6 : vector<8x32xf32>
    %cst_9 = arith.constant 0.000000e+00 : f32
    %8 = vector.broadcast %cst_9 : f32 to vector<8x32xf32>
    %9 = arith.maximumf %7, %8 : vector<8x32xf32>
    %cst_10 = arith.constant dense<0.000000e+00> : vector<1x8xf32>
    %10 = tpu.matmul %2, %9, %cst_10 {dimension_numbers = #tpu.dot_dimension_numbers<[1], [1], [0], [0], [0, 0, 1, 0], [], []>, precision = #tpu.contract_precision<fp32>} : vector<1x32xf32>, vector<8x32xf32>, vector<1x8xf32> -> vector<1x8xf32>
    %11 = vector.broadcast %3 : vector<1x1xf32> to vector<1x8xf32>
    %12 = arith.addf %10, %11 : vector<1x8xf32>
    %c0_11 = arith.constant 0 : index
    %c0_12 = arith.constant 0 : index
    %13 = vector.load %arg6[%c0_11, %c0_12] : memref<1x8xf32, #tpu.memory_space<vmem>>, vector<1x8xf32>
    tpu.vector_store %arg6[%c0_11, %c0_12], %12 {strides = array<i32>} : memref<1x8xf32, #tpu.memory_space<vmem>>, vector<1x8xf32>,
    return
  }
  func.func @transform_0(%arg0: i32) -> (i32, i32) {
    %c0_i32 = arith.constant 0 : i32
    %c0_i32_0 = arith.constant 0 : i32
    return %arg0, %c0_i32 : i32, i32
  }
  func.func @transform_1(%arg0: i32) -> (i32, i32) {
    %c0_i32 = arith.constant 0 : i32
    %c0_i32_0 = arith.constant 0 : i32
    %c0_i32_1 = arith.constant 0 : i32
    return %c0_i32, %c0_i32_0 : i32, i32
  }
  func.func @transform_2(%arg0: i32) -> (i32, i32) {
    %c0_i32 = arith.constant 0 : i32
    %c0_i32_0 = arith.constant 0 : i32
    %c0_i32_1 = arith.constant 0 : i32
    return %c0_i32, %c0_i32_0 : i32, i32
  }
  func.func @transform_3(%arg0: i32) -> (i32, i32) {
    %c0_i32 = arith.constant 0 : i32
    %c0_i32_0 = arith.constant 0 : i32
    %c0_i32_1 = arith.constant 0 : i32
    return %c0_i32, %c0_i32_0 : i32, i32
  }
  func.func @transform_4(%arg0: i32) -> (i32, i32) {
    %c0_i32 = arith.constant 0 : i32
    %c0_i32_0 = arith.constant 0 : i32
    %c0_i32_1 = arith.constant 0 : i32
    return %c0_i32, %c0_i32_0 : i32, i32
  }
  func.func @transform_5(%arg0: i32) -> (i32, i32) {
    %c0_i32 = arith.constant 0 : i32
    %c0_i32_0 = arith.constant 0 : i32
    return %c0_i32, %arg0 : i32, i32
  }
}

</mosaic_0001>

<bundles_post_ra>
// kernel: valuenet_forward.1
= control target key start
LH: loop header
LB: loop body
LE: loop exit
PB: predicated region body
PF: predicated region fallthrough
CT: control target
= control target key end

     0   :  { %s1351_s0 = inlined_call_operand.hbm [shape: f32[8,16], index: 0, kind: input, shape index: {}]   ;;  %s1352_s1 = inlined_call_operand.hbm [shape: f32[16,32], index: 1, kind: input, shape index: {}]   ;;  %s1353_s2 = inlined_call_operand.vmem [shape: f32[1,32], index: 2, kind: input, shape index: {}]   ;;  %s1354_s3 = inlined_call_operand.vmem [shape: f32[1,32], index: 3, kind: input, shape index: {}]   ;;  %s1355_s4 = inlined_call_operand.<no memory space> [shape: f32[1,1], index: 4, kind: input, shape index: {}]   ;;  %s1356_s5 = inlined_call_operand.hbm [shape: f32[1,8], index: 5, kind: output, shape index: {}]  }
   0x1   :  { %v10_v0 = vstv %s1355_s4 }
   0x2   :  { %11 = vst [vmem:[#allocation2] sm:$0x1] %v10_v0 }
   0x3   :  { %12 = vsyncpa [#allocation4], 0 }
   0x4   :  { %13 = vsyncpa [#allocation7], 0 }
   0x5   :  { %14 = vsyncpa [#allocation5], 0  ;;  %s1230_s20 = smov [#allocation3]   ;;  %s1231_s22 = smov [#allocation6]  }
   0x6   :  { %s21_s21 = sshll.u32 %s1230_s20, 4  ;;  %s30_s23 = sshll.u32 %s1231_s22, 4  ;;  %s22_s21 = int_to_ptr.vmem [resolvable:$true] %s21_s21  ;;  %s1272_s23 = int_to_ptr.vmem [resolvable:$true] %s30_s23 }
   0x7   :  { %s1158_s26 = scalar_lea.hbm %s1351_s0, 128 }
   0x8   :  { %p1159_p0 = scmp.ne.s32.totalorder %s1351_s0, %s1158_s26  ;;  %p1162_p1 = scmp.lt.u32.totalorder %s1158_s26, %s1351_s0 }
   0xa   :  { %p1164_p2 = pnand %p1162_p1, %p1159_p0 }
   0xc   :  { %1167 = shalt.err (!%p1164_p2)
}
   0xd   :  { %s1168_s30 = scalar_lea.vmem %s22_s21, 128  ;;  %p1173_p4 = scmp.lt.s32.totalorder %s22_s21, %s22_s21 }
   0xe   :  { %p1169_p3 = scmp.ne.s32.totalorder %s22_s21, %s1168_s30  ;;  %p1174_p5 = scmp.lt.s32.totalorder %s1168_s30, %s1168_s30 }
  0x10   :  { %p1175_p6 = por %p1174_p5, %p1173_p4 }
  0x12   :  { %p1176_p7 = pnand %p1175_p6, %p1169_p3 }
  0x14   :  { %1179 = shalt.err (!%p1176_p7)
}
  0x15   :  { %24 = dma.hbm_to_vmem [thread:$0]  %s1351_s0, 128, %s22_s21, [#allocation4]  }
  0x16   :  { %s1180_s10 = scalar_lea.hbm %s1352_s1, 256 }
  0x17   :  { %p1181_p8 = scmp.ne.s32.totalorder %s1352_s1, %s1180_s10  ;;  %p1184_p9 = scmp.lt.u32.totalorder %s1180_s10, %s1352_s1 }
  0x19   :  { %p1186_p10 = pnand %p1184_p9, %p1181_p8 }
  0x1b   :  { %1189 = shalt.err (!%p1186_p10)
}
  0x1c   :  { %s1190_s15 = scalar_lea.vmem %s1272_s23, 256  ;;  %p1195_p12 = scmp.lt.s32.totalorder %s1272_s23, %s1272_s23 }
  0x1d   :  { %p1191_p11 = scmp.ne.s32.totalorder %s1272_s23, %s1190_s15  ;;  %p1196_p13 = scmp.lt.s32.totalorder %s1190_s15, %s1190_s15 }
  0x1f   :  { %p1197_p0 = por %p1196_p13, %p1195_p12 }
  0x21   :  { %p1198_p1 = pnand %p1197_p0, %p1191_p11 }
  0x23   :  { %1201 = shalt.err (!%p1198_p1)
}
  0x24   :  { %s1232_s0 = smov 128   ;;  %s1233_s16 = smov 8  }
  0x25   :  { %36 = dma.hbm_to_vmem [thread:$0]  %s1352_s1, 256, %s1272_s23, [#allocation7], %s1232_s0, %s1232_s0, %s1233_s16  }
  0x26   :  { %1224 = dma.done.wait [#allocation4], 128  }
  0x27   :  { %1225 = vsyncadd [#allocation4], 4294967168 }
  0x28   :  { %1226 = dma.done.wait [#allocation7], 256  }
  0x29   :  { %1227 = vsyncadd [#allocation7], 4294967040  ;;  %v1234_v1 = vmov 0.0|0.0   ;;  %vm1235_vm0 = vmmov 0   ;;  %v1236_v2 = vmov 0.0   ;;  %vm61_vm1 = vcmask 130048  }
  0x2a   :  { %1108 = vmatprep.subr.bf16.mxu0 %v1234_v1  ;;  %1040 = vmatprep.mubr.msk.f32.mxu0 %vm1235_vm0, %v1236_v2  ;;  %v49_v3 = vld [vmem:[#allocation6] sm:$0xff]  ;;  %v50_v4 = vld [vmem:[#allocation6 + $0x8] sm:$0xff]  ;;  %v54_v5 = vld [vmem:[#allocation3] sm:$0xff]  ;;  %v1237_v27 = vmov 0   ;;  %vm534_vm2 = vcmask 261120   ;;  %v530_v46 = vlaneseq  ;;  %vm987_vm3 = vcmask 57344  }
  0x2b   :  { %1078 = vmatprep.subr.mxu1 %v1236_v2  ;;  %1080 = vmatprep.mubr.msk.f32.mxu1 %vm1235_vm0, %v1236_v2  ;;  %v66_v6 = vand.u32 4294901760, %v49_v3  ;;  %v69_v7 = vand.u32 4294901760, %v50_v4  ;;  %v63_v8 = vsel %vm61_vm1, %v54_v5, 0  ;;  %v53_v26 = vld [vmem:[#allocation2] sm:$0x1] }
  0x2c   :  { %v132_v9 = vand.u32 4294901760, %v63_v8  ;;  %1157 = vset.pattern.permute.xlu0 %v1237_v27  ;;  %v52_v28 = vld [vmem:[%s1354_s3] sm:$0x1]  ;;  %v531_v47 = vshrl.u32 %v530_v46, 7 }
  0x2d   :  { %v1109_v10 = vpack.c.bf16 %v69_v7, %v66_v6  ;;  %v144_v11 = vsub.f32 %v49_v3, %v66_v6  ;;  %v151_v12 = vsub.f32 %v50_v4, %v69_v7  ;;  %527 = vperm.xlu0 %1157, %v53_v26   ;;  %v536_v29 = vsel %vm534_vm2, %v52_v28, 0  ;;  %v1005_v32 = vld [vmem:[%s1353_s2] ss:$0 sm:$0xff]  ;;  %s1238_s2 = smov [#allocation8]  }
  0x2e   :  { %v133_v13 = vsub.f32 %v63_v8, %v132_v9  ;;  %v607_v30 = vand.u32 4294901760, %v536_v29  ;;  %v532_v48 = vsub.s32 0, %v531_v47  ;;  %s995_s3 = sshll.u32 %s1238_s2, 4  ;;  %s996_s3 = int_to_ptr.vmem [resolvable:$true] %s995_s3 }
  0x2f   :  { %1110 = vmatpush3.bf16.msra.mxu0 %v1109_v10  ;;  %v145_v14 = vand.u32 4294901760, %v144_v11  ;;  %v152_v15 = vand.u32 4294901760, %v151_v12  ;;  %v1115_v24 = vpack.c.bf16 %v151_v12, %v144_v11  ;;  %s1202_s22 = scalar_lea.vmem %s996_s3, 16  ;;  %s1206_s23 = scalar_lea.vmem %s996_s3, 32 }
  0x30   :  { %v134_v16 = vand.u32 4294901760, %v133_v13  ;;  %1111 = vmatprep.subr.bf16.mxu0 %v1234_v1  ;;  %v608_v31 = vsub.f32 %v536_v29, %v607_v30  ;;  %p1203_p2 = scmp.ne.s32.totalorder %s996_s3, %s1202_s22  ;;  %p1207_p3 = scmp.lt.s32.totalorder %s996_s3, %s996_s3 }
  0x31   :  { %v146_v17 = vsub.f32 %v144_v11, %v145_v14  ;;  %v153_v18 = vsub.f32 %v151_v12, %v152_v15  ;;  %v1121_v25 = vpack.c.bf16 %v152_v15, %v145_v14  ;;  %p1208_p4 = scmp.lt.s32.totalorder %s1206_s23, %s1202_s22 }
  0x32   :  { %v135_v19 = vsub.f32 %v133_v13, %v134_v16  ;;  %v609_v33 = vand.u32 4294901760, %v608_v31 }
  0x33   :  { %v147_v20 = vand.u32 4294901760, %v146_v17  ;;  %v154_v21 = vand.u32 4294901760, %v153_v18  ;;  %p1209_p5 = por %p1208_p4, %p1207_p3 }
  0x34   :  { %v136_v22 = vand.u32 4294901760, %v135_v19  ;;  %v610_v38 = vsub.f32 %v608_v31, %v609_v33 }
  0x35   :  { %v1112_v23 = vpack.c.bf16 %v154_v21, %v147_v20  ;;  %p1210_p6 = pnand %p1209_p5, %p1203_p2 }
  0x36   :  { %1041 = vmatmul.mubr.f32.vlgmr.msra.gmra.mrb[0].mxu0 %v136_v22  ;;  %v611_v41 = vand.u32 4294901760, %v610_v38 }
  0x37   :  { %1113 = vmatpush3.bf16.msra.mxu0 %v1112_v23  ;;  %1047 = vmatprep.mubr.msk.f32.mxu0 %vm1235_vm0, %v1236_v2 }
  0x38   :  { %1114 = vmatprep.subr.bf16.mxu0 %v1234_v1 }
  0x3e   :  { %1048 = vmatmul.mubr.f32.vlgmr.msra.gmra.mrb[0].mxu0 %v132_v9 }
  0x3f   :  { %1116 = vmatpush3.bf16.msra.mxu0 %v1115_v24  ;;  %1054 = vmatprep.mubr.msk.f32.mxu0 %vm1235_vm0, %v1236_v2 }
  0x40   :  { %1117 = vmatprep.subr.bf16.mxu0 %v1234_v1 }
  0x46   :  { %1055 = vmatmul.mubr.f32.vlgmr.msra.gmra.mrb[0].mxu0 %v133_v13 }
  0x47   :  { %1119 = vmatpush3.bf16.msra.mxu0 %v1109_v10  ;;  %1061 = vmatprep.mubr.msk.f32.mxu0 %vm1235_vm0, %v1236_v2 }
  0x48   :  { %1120 = vmatprep.subr.bf16.mxu0 %v1234_v1 }
  0x4e   :  { %1062 = vmatmul.mubr.f32.vlgmr.msra.gmra.mrb[0].mxu0 %v134_v16 }
  0x4f   :  { %1122 = vmatpush3.bf16.msra.mxu0 %v1121_v25  ;;  %1068 = vmatprep.mubr.msk.f32.mxu0 %vm1235_vm0, %v1236_v2 }
  0x50   :  { %1123 = vmatprep.subr.bf16.mxu0 %v1234_v1 }
  0x56   :  { %1069 = vmatmul.mubr.f32.vlgmr.msra.gmra.mrb[0].mxu0 %v132_v9 }
  0x57   :  { %1125 = vmatpush3.bf16.msra.mxu0 %v1109_v10  ;;  %1075 = vmatprep.mubr.msk.f32.mxu0 %vm1235_vm0, %v1236_v2 }
  0x5e   :  { %1076 = vmatmul.mubr.f32.vlgmr.msra.gmra.mrb[0].mxu0 %v132_v9 }
  0xac   :  { %v528_v49 = vpop.permute.xlu0 %527 }
  0xad   :  { %v533_v50 = vrot.slane %v528_v49, %v532_v48 }
 0x131   :  { %v520_v34 = vpop.f32.mrb[0].mxu0 }
 0x132   :  { %v1126_v35 = vadd.f32 %v1005_v32, %v520_v34  ;;  %v1077_v36 = vpop.f32.mrb[1].mxu0 }
 0x134   :  { %v524_v37 = vmax.f32 %v1126_v35, 0.0 }
 0x136   :  { %v539_v39 = vsel %vm534_vm2, %v524_v37, 0 }
 0x137   :  { %v542_v40 = vand.u32 4294901760, %v539_v39 }
 0x139   :  { %v619_v42 = vsub.f32 %v539_v39, %v542_v40  ;;  %1079 = vmatpush3.xpose.msra.mxu1 %v542_v40 }
 0x13a   :  { %1083 = vmatprep.subr.mxu1 %v1236_v2 }
 0x13b   :  { %v620_v43 = vand.u32 4294901760, %v619_v42 }
 0x13c   :  { %1081 = vmatmul.mubr.f32.vlgmr.msra.gmra.mrb[0].mxu1 %v611_v41 }
 0x13d   :  { %v621_v44 = vsub.f32 %v619_v42, %v620_v43  ;;  %1085 = vmatprep.mubr.msk.f32.mxu1 %vm1235_vm0, %v1236_v2 }
 0x13f   :  { %v622_v45 = vand.u32 4294901760, %v621_v44 }
 0x141   :  { %1084 = vmatpush3.xpose.msra.mxu1 %v622_v45 }
 0x142   :  { %1088 = vmatprep.subr.mxu1 %v1236_v2 }
 0x144   :  { %1086 = vmatmul.mubr.f32.vlgmr.msra.gmra.mrb[0].mxu1 %v607_v30 }
 0x145   :  { %1089 = vmatpush3.xpose.msra.mxu1 %v619_v42  ;;  %1090 = vmatprep.mubr.msk.f32.mxu1 %vm1235_vm0, %v1236_v2 }
 0x146   :  { %1093 = vmatprep.subr.mxu1 %v1236_v2 }
 0x14c   :  { %1091 = vmatmul.mubr.f32.vlgmr.msra.gmra.mrb[0].mxu1 %v608_v31 }
 0x14d   :  { %1094 = vmatpush3.xpose.msra.mxu1 %v542_v40  ;;  %1095 = vmatprep.mubr.msk.f32.mxu1 %vm1235_vm0, %v1236_v2 }
 0x14e   :  { %1098 = vmatprep.subr.mxu1 %v1236_v2 }
 0x154   :  { %1096 = vmatmul.mubr.f32.vlgmr.msra.gmra.mrb[0].mxu1 %v609_v33 }
 0x155   :  { %1099 = vmatpush3.xpose.msra.mxu1 %v620_v43  ;;  %1100 = vmatprep.mubr.msk.f32.mxu1 %vm1235_vm0, %v1236_v2 }
 0x156   :  { %1103 = vmatprep.subr.mxu1 %v1236_v2 }
 0x15c   :  { %1101 = vmatmul.mubr.f32.vlgmr.msra.gmra.mrb[0].mxu1 %v607_v30 }
 0x15d   :  { %1104 = vmatpush3.xpose.msra.mxu1 %v542_v40  ;;  %1105 = vmatprep.mubr.msk.f32.mxu1 %vm1235_vm0, %v1236_v2 }
 0x164   :  { %1106 = vmatmul.mubr.f32.vlgmr.msra.gmra.mrb[0].mxu1 %v607_v30 }
 0x237   :  { %v983_v51 = vpop.f32.mrb[0].mxu1 }
 0x238   :  { %v1127_v52 = vadd.f32 %v983_v51, %v533_v50  ;;  %v1107_v53 = vpop.f32.mrb[1].mxu1 }
 0x23a   :  { %988 = vst.msk [vmem:[#allocation8] sm:$0x1] %vm987_vm3, %v1127_v52 }
 0x23b   :  { %1213 = shalt.err (!%p1210_p6)
}
 0x23c   :  { %s1214_s26 = scalar_lea.hbm %s1356_s5, 16 }
 0x23d   :  { %p1215_p7 = scmp.ne.s32.totalorder %s1356_s5, %s1214_s26  ;;  %p1218_p8 = scmp.lt.u32.totalorder %s1214_s26, %s1356_s5 }
 0x23f   :  { %p1220_p9 = pnand %p1218_p8, %p1215_p7 }
 0x241   :  { %1223 = shalt.err (!%p1220_p9)
}
 0x242   :  { %998 = dma.vmem_to_hbm [thread:$0]  %s996_s3, 16, %s1356_s5, [#allocation5]  }
 0x243   :  { %1228 = dma.done.wait [#allocation5], 16  }
 0x244   :  { %1229 = vsyncadd [#allocation5], 4294967280 }
 0x245   :  { %1002 = vsyncpa [#allocation4], 1 }
 0x246   :  { %1003 = vsyncpa [#allocation7], 1 }
 0x247   :  { %1004 = vsyncpa [#allocation5], 1 }

</bundles_post_ra>
